<compile_context>
chip_gen: v7x
topology: tpu7x:2x2x1
jax: 0.10.0
libtpu: 0.0.40
codegen_flags: <defaults>
</compile_context>

<pallas_src>
import jax
import jax.numpy as jnp
from jax import lax
from jax.experimental import pallas as pl
from jax.experimental.pallas import tpu as pltpu


def _proj_kernel_tokens_major(x_ref, w_ref, b_ref, o_ref):
    # E >= 128 path.  x_ref: (1, C, tn)  w_ref: (C, E)  b_ref: (1, E)  o_ref: (1, tn, E)
    x = x_ref[0]                                            # (C, tn)
    acc = lax.dot_general(
        x, w_ref[...],
        dimension_numbers=(((0,), (0,)), ((), ())),          # contract C
        preferred_element_type=jnp.float32,
    )                                                        # (tn, E) f32
    o_ref[0] = (acc + b_ref[...]).astype(o_ref.dtype)


def _proj_kernel_embed_major(x_ref, w_ref, b_ref, o_ref):
    # E < 128 path: keep tokens on the lane axis of the output (unmasked stores).
    # x_ref: (1, C, tn)  w_ref: (C, E)  b_ref: (E, 1)  o_ref: (1, E, tn)
    x = x_ref[0]                                            # (C, tn)
    acc = lax.dot_general(
        w_ref[...], x,
        dimension_numbers=(((0,), (0,)), ((), ())),          # contract C
        preferred_element_type=jnp.float32,
    )                                                        # (E, tn) f32
    o_ref[0] = (acc + b_ref[...]).astype(o_ref.dtype)


def _pick_token_tile(hw, batch, c, e, in_itemsize, out_itemsize,
                     cap_tokens=2048, vmem_budget=24 * 1024 * 1024):
    """Largest legal token tile: full HW, or a multiple of 128, under a VMEM budget."""
    def step_bytes(t):
        # double-buffered x tile + out tile, plus (double-buffered) resident w/b
        return (2 * (c * t * in_itemsize + t * e * out_itemsize)
                + 2 * (c * e + e) * in_itemsize)

    # Single full-extent block is legal regardless of 128-alignment.
    if hw <= cap_tokens and step_bytes(hw) <= vmem_budget and (batch >= 2 or hw <= 128):
        return hw

    t = min(cap_tokens, hw)
    t = max(128, (t // 128) * 128)
    if batch < 2:
        # Keep >= 2 token blocks so the parallel grid can split across 2 TCs (v7x).
        half = max(128, ((hw // 2) // 128) * 128)
        t = min(t, half)
    while t > 128 and step_bytes(t) > vmem_budget:
        t -= 128
    return t


def mlp_forward(x_nchw, weight, bias, *, cap_tokens=2048, compute_dtype=None):
    """Pallas implementation of the SegFormer MLP head forward.

    x_nchw : (B, C, H, W)
    weight : (E, C)   (PyTorch nn.Linear convention)
    bias   : (E,)
    returns: (B, H*W, E)
    """
    B, C, H, W = x_nchw.shape
    E = weight.shape[0]
    HW = H * W

    x3d = x_nchw.reshape(B, C, HW)      # free: contiguous merge of H,W, no transpose
    w = weight.T                        # (C, E) -- tiny, one-time layout fix
    if compute_dtype is not None:
        x3d = x3d.astype(compute_dtype)
        w = w.astype(compute_dtype)
    out_dtype = x3d.dtype

    in_itemsize = jnp.dtype(x3d.dtype).itemsize
    out_itemsize = jnp.dtype(out_dtype).itemsize
    w_itemsize = jnp.dtype(w.dtype).itemsize
    b_itemsize = jnp.dtype(jnp.float32).itemsize

    tn = _pick_token_tile(HW, B, C, E, in_itemsize, out_itemsize, cap_tokens=cap_tokens)
    grid = (B, pl.cdiv(HW, tn))

    cost = pl.CostEstimate(
        flops=2 * B * HW * C * E,
        transcendentals=0,
        bytes_accessed=(B * HW * C * in_itemsize
                        + C * E * w_itemsize
                        + E * b_itemsize
                        + B * HW * E * out_itemsize),
    )

    x_spec = pl.BlockSpec((1, C, tn), lambda bi, ti: (bi, 0, ti))   # lane-dense token tile
    w_spec = pl.BlockSpec((C, E), lambda bi, ti: (0, 0))            # resident weight

    compiler_params = pltpu.CompilerParams(
        dimension_semantics=("parallel", "parallel"),
        vmem_limit_bytes=32 * 1024 * 1024,
    )

    if E < 128:
        # Embed-major output: (B, E, HW) with tokens lane-dense; transpose in wrapper.
        b_em = bias.reshape(E, 1).astype(jnp.float32)
        out_eht = pl.pallas_call(
            _proj_kernel_embed_major,
            out_shape=jax.ShapeDtypeStruct((B, E, HW), out_dtype),
            grid_spec=pltpu.PrefetchScalarGridSpec(
                num_scalar_prefetch=0,
                grid=grid,
                in_specs=[
                    x_spec,
                    w_spec,
                    pl.BlockSpec((E, 1), lambda bi, ti: (0, 0)),    # resident bias
                ],
                out_specs=pl.BlockSpec((1, E, tn), lambda bi, ti: (bi, 0, ti)),
            ),
            compiler_params=compiler_params,
            cost_estimate=cost,
        )(x3d, w, b_em)
        # Cheap XLA transpose (fuses with the consumer in a real model).
        return jnp.transpose(out_eht, (0, 2, 1))

    # Token-major output: E >= 128 is already lane-dense on the last axis.
    b_tm = bias.reshape(1, E).astype(jnp.float32)
    out = pl.pallas_call(
        _proj_kernel_tokens_major,
        out_shape=jax.ShapeDtypeStruct((B, HW, E), out_dtype),
        grid_spec=pltpu.PrefetchScalarGridSpec(
            num_scalar_prefetch=0,
            grid=grid,
            in_specs=[
                x_spec,
                w_spec,
                pl.BlockSpec((1, E), lambda bi, ti: (0, 0)),        # resident bias
            ],
            out_specs=pl.BlockSpec((1, tn, E), lambda bi, ti: (bi, ti, 0)),
        ),
        compiler_params=compiler_params,
        cost_estimate=cost,
    )(x3d, w, b_tm)
    return out


if __name__ == "__main__":
    # Small shapes consistent with the module's forward.
    B, C, H, W = 2, 4, 16, 16     # input_dim = C = 4
    E = 32                        # embed_dim = 32

    key = jax.random.PRNGKey(0)
    kx, kw, kb = jax.random.split(key, 3)

    x = jax.random.normal(kx, (B, C, H, W), dtype=jnp.float32)
    # Deterministic nn.Linear-style init (uniform in +/- 1/sqrt(C)).
    bound = 1.0 / (C ** 0.5)
    weight = jax.random.uniform(kw, (E, C), minval=-bound, maxval=bound, dtype=jnp.float32)
    bias = jax.random.uniform(kb, (E,), minval=-bound, maxval=bound, dtype=jnp.float32)

    out = mlp_forward(x, weight, bias)
    out = jax.block_until_ready(out)

    # Pure-JAX reference check (matches PyTorch forward exactly).
    x2d_ref = jnp.transpose(x.reshape(B, C, H * W), (0, 2, 1))
    ref = jnp.einsum("bnc,ec->bne", x2d_ref, weight) + bias
    assert out.shape == (B, H * W, E)
    assert jnp.allclose(out, ref, atol=1e-5, rtol=1e-5)

    print("KERNEL_OK")
</pallas_src>

<mosaic_0001>
module attributes {stable_mosaic.version = 11 : i64} {
  func.func @_proj_kernel_embed_major(%arg0: i32, %arg1: i32, %arg2: memref<1x4x256xf32, #tpu.memory_space<vmem>>, %arg3: memref<4x32xf32, #tpu.memory_space<vmem>>, %arg4: memref<32x1xf32, #tpu.memory_space<vmem>>, %arg5: memref<1x32x256xf32, #tpu.memory_space<vmem>>) attributes {dimension_semantics = [#tpu.dimension_semantics<parallel>, #tpu.dimension_semantics<parallel>], iteration_bounds = array<i64: 2, 1>, scalar_prefetch = 0 : i64, scratch_operands = 0 : i64, tpu.core_type = #tpu.core_type<tc>, window_params = [{transform_indices = @transform_0, window_bounds = array<i64: 1, 4, 256>}, {pipeline_mode = #tpu.pipeline_mode<synchronous>, transform_indices = @transform_1, window_bounds = array<i64: 4, 32>}, {pipeline_mode = #tpu.pipeline_mode<synchronous>, transform_indices = @transform_2, window_bounds = array<i64: 32, 1>}, {transform_indices = @transform_3, window_bounds = array<i64: 1, 32, 256>}]} {
    %c0 = arith.constant 0 : index
    %c0_0 = arith.constant 0 : index
    %c0_1 = arith.constant 0 : index
    %0 = vector.load %arg2[%c0, %c0_0, %c0_1] : memref<1x4x256xf32, #tpu.memory_space<vmem>>, vector<1x4x256xf32>
    %1 = vector.shape_cast %0 : vector<1x4x256xf32> to vector<4x256xf32>
    %c0_2 = arith.constant 0 : index
    %c0_3 = arith.constant 0 : index
    %2 = vector.load %arg3[%c0_2, %c0_3] : memref<4x32xf32, #tpu.memory_space<vmem>>, vector<4x32xf32>
    %cst = arith.constant dense<0.000000e+00> : vector<32x256xf32>
    %3 = tpu.matmul %2, %1, %cst {dimension_numbers = #tpu.dot_dimension_numbers<[0], [0], [1], [1], [0, 1, 1, 1], [], []>} : vector<4x32xf32>, vector<4x256xf32>, vector<32x256xf32> -> vector<32x256xf32>
    %c0_4 = arith.constant 0 : index
    %c0_5 = arith.constant 0 : index
    %4 = vector.load %arg4[%c0_4, %c0_5] : memref<32x1xf32, #tpu.memory_space<vmem>>, vector<32x1xf32>
    %5 = vector.broadcast %4 : vector<32x1xf32> to vector<32x256xf32>
    %6 = arith.addf %3, %5 : vector<32x256xf32>
    %c0_6 = arith.constant 0 : index
    %c0_7 = arith.constant 0 : index
    %c0_8 = arith.constant 0 : index
    %7 = vector.load %arg5[%c0_6, %c0_7, %c0_8] : memref<1x32x256xf32, #tpu.memory_space<vmem>>, vector<1x32x256xf32>
    %8 = vector.shape_cast %7 : vector<1x32x256xf32> to vector<32x256xf32>
    %9 = vector.shape_cast %6 : vector<32x256xf32> to vector<1x32x256xf32>
    tpu.vector_store %arg5[%c0_6, %c0_7, %c0_8], %9 {strides = array<i32>} : memref<1x32x256xf32, #tpu.memory_space<vmem>>, vector<1x32x256xf32>,
    return
  }
  func.func @transform_0(%arg0: i32, %arg1: i32) -> (i32, i32, i32) {
    %c0_i32 = arith.constant 0 : i32
    %c0_i32_0 = arith.constant 0 : i32
    return %arg0, %c0_i32, %arg1 : i32, i32, i32
  }
  func.func @transform_1(%arg0: i32, %arg1: i32) -> (i32, i32) {
    %c0_i32 = arith.constant 0 : i32
    %c0_i32_0 = arith.constant 0 : i32
    %c0_i32_1 = arith.constant 0 : i32
    return %c0_i32, %c0_i32_0 : i32, i32
  }
  func.func @transform_2(%arg0: i32, %arg1: i32) -> (i32, i32) {
    %c0_i32 = arith.constant 0 : i32
    %c0_i32_0 = arith.constant 0 : i32
    %c0_i32_1 = arith.constant 0 : i32
    return %c0_i32, %c0_i32_0 : i32, i32
  }
  func.func @transform_3(%arg0: i32, %arg1: i32) -> (i32, i32, i32) {
    %c0_i32 = arith.constant 0 : i32
    %c0_i32_0 = arith.constant 0 : i32
    return %arg0, %c0_i32, %arg1 : i32, i32, i32
  }
}

</mosaic_0001>

<bundles_post_ra>
// kernel: tpu_custom_call.1
= control target key start
LH: loop header
LB: loop body
LE: loop exit
PB: predicated region body
PF: predicated region fallthrough
CT: control target
= control target key end

     0   :  { %8 = vsyncpa [#allocation3], 0  ;;  %s794_s0 = inlined_call_operand.vmem [shape: f32[2,4,256], index: 0, kind: input, shape index: {}]   ;;  %s795_s1 = inlined_call_operand.vmem [shape: f32[4,32], index: 1, kind: input, shape index: {}]   ;;  %s796_s2 = inlined_call_operand.vmem [shape: f32[32,1], index: 2, kind: input, shape index: {}]   ;;  %s797_s3 = inlined_call_operand.hbm [shape: f32[2,32,256], index: 3, kind: output, shape index: {}]  }
   0x1   :  { %10 = vsyncpa [#allocation3 + $0x1], 0  ;;  %s660_s12 = smov 0   ;;  %s662_s13 = smov 0  }
   0x2   :  { %s664_s14 = smov 0   ;;  %s666_s15 = smov 0  }
   0x3   :  { %s668_s16 = smov 0   ;;  %s670_s17 = smov 0  }
   0x4 LB: > { %s470_s18 = sadd.s32 4294967295, %s633_s17   ;;  %s471_s19 = sadd.s32 4294967294, %s633_s17   ;;  %s633_s17 = sphi %s670_s17, %s16_s17   ;;  %s629_s16 = sphi %s668_s16, %s804_s16   ;;  %s625_s15 = sphi %s666_s15, %s803_s15   ;;  %s621_s14 = sphi %s664_s14, %s802_s14   ;;  %s617_s13 = sphi %s662_s13, %s801_s13   ;;  %s613_s12 = sphi %s660_s12, %s800_s12  }
   0x5   : > { %s28_s20 = sadd.s32 1, %s629_s16  ;;  %s107_s21 = sadd.s32 1, %s621_s14 }
   0x6   : > { %p30_p0 = scmp.ge.s32.totalorder %s28_s20, 2  ;;  %p117_p1 = scmp.ne.s32.totalorder %s621_s14, %s617_s13 }
   0x7   : > { %p118_p2 = scmp.eq.s32.totalorder %s470_s18, 1  ;;  %p123_p3 = scmp.ne.s32.totalorder %s617_s13, %s613_s12 }
   0x8   : > { %s806_s20 = smov (%p30_p0, %s28_s20), 0  ;;  %p124_p5 = scmp.eq.s32.totalorder %s471_s19, 1 }
   0x9   : > { %p700_p4 = por %p118_p2, %p117_p1  ;;  %s102_s23 = ssub.s32 %s629_s16, %s806_s20 }
   0xa   : > { %p474_p6 = scmp.ge.s32.totalorder %s633_s17, 1  ;;  %p105_p7 = scmp.eq.s32.totalorder %s102_s23, 0 }
   0xb   : > { %p707_p8 = por %p124_p5, %p123_p3  ;;  %p161_p9 = scmp.lt.s32.totalorder %s633_s17, 3 }
   0xc   : > { %s713_s25 = scalar_select %p105_p7, %s621_s14, %s107_s21  }
   0xd   : > { %p162_p10 = pnand %p474_p6, %p161_p9 }
   0xe   : > { %v201_v0 = vld [vmem:[%s795_s1] sm:$0xf] (!%p162_p10)  ;;  %p190_p11 = scmp.lt.s32.totalorder (!%p162_p10), %s625_s15, 1  ;;  %v635_v1 = vmov (!%p162_p10), 0.0   ;;  %vm273_vm0 = vcmask (!%p162_p10), 1043456   ;;  %v203_v4 = vld [vmem:[%s796_s2 + $0x8] sm:$0xff] (!%p162_p10) }
   0xf   : > { %165 = sbr.rel (%p162_p10) target bundleno = 386 (0x182), region = 32  ;;  %226 = vxpose.xlu0.b32.start.end [1/1] (short) (narrow) (!%p162_p10), %v201_v0, 32  ;;  %342 = vmatprep.mubr.f32.mxu0 (!%p162_p10), %v635_v1  ;;  %v636_v5 = vmov (!%p162_p10), 0   ;;  %v204_v6 = vld [vmem:[%s796_s2 + $0x10] sm:$0xff] (!%p162_p10)  ;;  %v205_v7 = vld [vmem:[%s796_s2 + $0x18] sm:$0xff] (!%p162_p10)  ;;  %v202_v8 = vld [vmem:[%s796_s2] sm:$0xff] (!%p162_p10) }
  0x10   : > { %354 = vmatprep.mubr.f32.mxu1 (!%p162_p10), %v635_v1  ;;  %553 = vset.pattern.permute.xlu1 (!%p162_p10), %v636_v5  ;;  %vm260_vm1 = vcmask (!%p162_p10), 31744   ;;  %s186_s21 = sand.u32 (!%p162_p10), 1, %s617_s13   ;;  %s490_s27 = sshll.u32 (!%p162_p10), %s625_s15, 10 }
  0x11   : > { %213 = vperm.xlu1 (!%p162_p10), %553, %v203_v4   ;;  %s475_s23 = sshll.u32 (!%p162_p10), %s186_s21, 6  ;;  %s742_s4 = scalar_lea.hbm (!%p162_p10), %s797_s3, %s490_s27 }
  0x12   : > { %s188_s26 = scalar_lea.vmem (!%p162_p10), [#allocation2], %s475_s23  ;;  %s637_s6 = smov (!%p162_p10), [#allocation2]  }
  0x13   : > { %s559_s7 = sshll.u32 (!%p162_p10), %s637_s6, 4  ;;  %s560_s7 = int_to_ptr.vmem [resolvable:$false] %s559_s7 }
  0x14   : > { %s561_s8 = scalar_lea.vmem (!%p162_p10), %s560_s7, 2048 }
  0x15   : > { %218 = vperm.xlu1 (!%p162_p10), %553, %v204_v6  }
  0x16   : > { %s191_s28 = scalar_select %p190_p11, %s625_s15, 1 }
  0x17   : > { %s748_s15 = scalar_lea.sflag [#allocation3], %s186_s21 }
  0x18   : > { %s489_s29 = sshll.u32 %s191_s28, 3  ;;  %s391_s28 = sshll.u32 %s188_s26, 4  ;;  %s744_s28 = int_to_ptr.vmem [resolvable:$true] %s391_s28 }
  0x19   : > { %s197_s5 = scalar_lea.vmem %s794_s0, %s489_s29  ;;  %223 = vperm.xlu1 %553, %v205_v7   ;;  %p562_p1 = scmp.lt.s32.totalorder %s744_s28, %s560_s7 }
  0x1a   : > { %v200_v2 = vld [vmem:[%s197_s5] sm:$0xff]  ;;  %s555_s5 = scalar_lea.vmem %s744_s28, 1024 }
  0x1b   : > { %v259_v3 = vcombine.high %v200_v2, %v200_v2  ;;  %p556_p12 = scmp.ne.s32.totalorder %s744_s28, %s555_s5  ;;  %p563_p2 = scmp.lt.s32.totalorder %s561_s8, %s555_s5 }
  0x1d   : > { %478 = vmatprep.subr.msk.mxu0 %vm273_vm0, %v259_v3  ;;  %491 = vmatprep.subr.msk.mxu1 %vm273_vm0, %v259_v3  ;;  %p557_p13 = pnand %p556_p12, %p700_p4  ;;  %p564_p3 = por %p563_p2, %p562_p1 }
  0x1e   : > { %479 = vmatpush1.msk.msra.mxu0 %vm273_vm0, %v200_v2  ;;  %492 = vmatpush1.msk.msra.mxu1 %vm273_vm0, %v200_v2 }
  0x1f   : > { %p558_p0 = pneg %p557_p13 }
  0x21   : > { %p565_p5 = pnand %p564_p3, %p558_p0 }
  0x38   : > { %552 = vset.pattern.permute.xlu0 %v636_v5 }
  0x44   : > { %208 = vperm.xlu0 %552, %v202_v8  }
  0x8f   : > { %v242_v9 = vpop.trf.xlu0 }
  0x90   : > { %480 = vmatmul.mubr.msk.f32.vlgmr.msra.gmra.mrb[0].mxu0 %vm260_vm1, %v242_v9  ;;  %v214_v14 = vpop.permute.xlu1 %213 }
  0x91   : > { %348 = vmatprep.mubr.f32.mxu0 %v635_v1 }
  0x93   : > { %v243_v10 = vpop.trf.xlu0 }
  0x94   : > { %481 = vmatmul.mubr.msk.f32.gmra.mrb[2].mxu0 %vm260_vm1, %v243_v10  ;;  %v219_v22 = vpop.permute.xlu1 %218 }
  0x97   : > { %v244_v11 = vpop.trf.xlu0 }
  0x98   : > { %482 = vmatmul.mubr.msk.f32.vlgmr.msra.gmra.mrb[0].mxu1 %vm260_vm1, %v244_v11  ;;  %v224_v28 = vpop.permute.xlu1 %223 }
  0x99   : > { %360 = vmatprep.mubr.f32.mxu1 %v635_v1 }
  0x9b   : > { %v245_v12 = vpop.trf.xlu0 }
  0x9c   : > { %483 = vmatmul.mubr.msk.f32.gmra.mrb[2].mxu1 %vm260_vm1, %v245_v12 }
  0xc3   : > { %v209_v13 = vpop.permute.xlu0 %208 }
 0x163   : > { %v344_v15 = vpop.f32.mrb[0].mxu0 }
 0x164   : > { %v345_v16 = vadd.f32 %v344_v15, %v209_v13  ;;  %v346_v17 = vpop.f32.mrb[1].mxu0 }
 0x165   : > { %v347_v18 = vadd.f32 %v346_v17, %v209_v13 }
 0x166   : > { %367 = vst [vmem:[%s188_s26] sm:$0xff] %v345_v16 }
 0x167   : > { %368 = vst [vmem:[%s188_s26 + $0x8] sm:$0xff] %v347_v18  ;;  %v350_v19 = vpop.f32.mrb[2].mxu0 }
 0x168   : > { %v351_v20 = vadd.f32 %v350_v19, %v214_v14  ;;  %v352_v21 = vpop.f32.mrb[3].mxu0 }
 0x169   : > { %v353_v23 = vadd.f32 %v352_v21, %v214_v14 }
 0x16a   : > { %369 = vst [vmem:[%s188_s26 + $0x10] sm:$0xff] %v351_v20 }
 0x16b   : > { %370 = vst [vmem:[%s188_s26 + $0x18] sm:$0xff] %v353_v23  ;;  %v356_v24 = vpop.f32.mrb[0].mxu1 }
 0x16c   : > { %v357_v25 = vadd.f32 %v356_v24, %v219_v22  ;;  %v358_v26 = vpop.f32.mrb[1].mxu1 }
 0x16d   : > { %v359_v27 = vadd.f32 %v358_v26, %v219_v22 }
 0x16e   : > { %371 = vst [vmem:[%s188_s26 + $0x20] sm:$0xff] %v357_v25 }
 0x16f   : > { %372 = vst [vmem:[%s188_s26 + $0x28] sm:$0xff] %v359_v27  ;;  %v362_v29 = vpop.f32.mrb[2].mxu1 }
 0x170   : > { %v363_v30 = vadd.f32 %v362_v29, %v224_v28  ;;  %v364_v31 = vpop.f32.mrb[3].mxu1 }
 0x171   : > { %v365_v32 = vadd.f32 %v364_v31, %v224_v28 }
 0x172   : > { %373 = vst [vmem:[%s188_s26 + $0x30] sm:$0xff] %v363_v30 }
 0x173   : > { %374 = vst [vmem:[%s188_s26 + $0x38] sm:$0xff] %v365_v32 }
 0x174   : > { %568 = shalt.err (!%p565_p5)
}
 0x175   : > { %s569_s9 = scalar_lea.hbm %s742_s4, 1024  ;;  %s573_s18 = scalar_lea.hbm %s797_s3, 2048 }
 0x176   : > { %p570_p6 = scmp.ne.s32.totalorder %s742_s4, %s569_s9  ;;  %p574_p10 = scmp.lt.u32.totalorder %s742_s4, %s797_s3 }
 0x177   : > { %p575_p11 = scmp.lt.u32.totalorder %s573_s18, %s569_s9  ;;  %p577_p13 = scmp.lt.u32.totalorder %s569_s9, %s742_s4 }
 0x178   : > { %p571_p7 = pnand %p570_p6, %p700_p4 }
 0x179   : > { %p576_p12 = por %p575_p11, %p574_p10 }
 0x17a   : > { %p572_p9 = pneg %p571_p7 }
 0x17b   : > { %p578_p0 = por %p577_p13, %p576_p12 }
 0x17d   : > { %p579_p1 = pnand %p578_p0, %p572_p9 }
 0x17f   : > { %582 = shalt.err (!%p579_p1)
}
 0x180   : > { %s638_s23 = smov 256   ;;  %s639_s26 = smov 16  }
 0x181   : > { %493 = dma.vmem_to_hbm [thread:$0]  (%p700_p4), %s744_s28, 1024, %s742_s4, %s748_s15, %s638_s23, %s638_s23, %s639_s26  }
 0x182 PF: > { %p499_p2 = scmp.ge.s32.totalorder %s633_s17, 2  ;;  %s406_s27 = sand.u32 1, %s613_s12  }
 0x183   : > { %s407_s29 = scalar_lea.sflag [#allocation3], %s406_s27 }
 0x184   : > { %p496_p3 = pnand %p499_p2, %p707_p8 }
 0x186   : > { %608 = dma.done.wait (!%p496_p3), %s407_s29, 1024  }
 0x187   : > { %610 = vsyncadd (!%p496_p3), %s407_s29, 4294966272  ;;  %s16_s17 = sadd.s32 1, %s633_s17   ;;  %s800_s12 = smov %s617_s13 }
 0x188   : > { %p13_p5 = scmp.ge.s32.totalorder %s16_s17, 4   ;;  %s801_s13 = smov %s621_s14 }
 0x189   : > { %s802_s14 = smov %s713_s25  ;;  %s803_s15 = smov %s629_s16 }
 0x18a   : > { %s804_s16 = smov %s806_s20  ;;  %15 = sbr.rel (!%p13_p5) target bundleno = 4 (0x4), region = 67 }
 0x191   :  { %412 = vsyncpa [#allocation3], 1 }
 0x192   :  { %414 = vsyncpa [#allocation3 + $0x1], 1 }

</bundles_post_ra>
